<compile_context>
chip_gen: v5e
topology: v5e:2x2
jax: 0.10.0
libtpu: 0.0.40
codegen_flags: <defaults>
</compile_context>

<pallas_src>
import functools

import jax
import jax.numpy as jnp
import numpy as np
from jax.experimental import pallas as pl
from jax.experimental.pallas import tpu as pltpu


def _dice_loss_kernel(x_ref, t_ref, o_ref, acc_i, acc_p, acc_t, *,
                      num_classes, cf, smooth, skip_bg, p_total, p_blk, fast_path):
    C = num_classes
    n_id = pl.program_id(0)
    p_id = pl.program_id(1)
    is_first = jnp.logical_and(n_id == 0, p_id == 0)
    is_last = jnp.logical_and(n_id == pl.num_programs(0) - 1,
                              p_id == pl.num_programs(1) - 1)

    @pl.when(is_first)
    def _init():
        acc_i[...] = jnp.zeros_like(acc_i)
        acc_p[...] = jnp.zeros_like(acc_p)
        acc_t[...] = jnp.zeros_like(acc_t)

    x = x_ref[0].astype(jnp.float32)        # (C, Pblk)  logits tile
    t = t_ref[0]                            # (1, Pblk)  int32 class ids

    # --- softmax over the class (sublane) axis: one reciprocal per pixel ---
    m = jnp.max(x, axis=0, keepdims=True)
    e = jnp.exp(x - m)
    probs = e * pl.reciprocal(jnp.sum(e, axis=0, keepdims=True), approx=False)

    # --- one-hot as a boolean mask; background row dropped via the row mask ---
    cls = jax.lax.broadcasted_iota(jnp.int32, (C, p_blk), 0)
    keep_row = cls >= (1 if skip_bg else 0)
    onehot = jnp.logical_and(t == cls, keep_row)          # bool (C, Pblk)
    probs_m = jnp.where(keep_row, probs, 0.0)
    prod = jnp.where(onehot, probs, 0.0)
    onehot_f = onehot.astype(jnp.float32)

    if fast_path:
        # column == lane % C for every row -> per-lane partial sums are enough.
        acc_i[...] += jnp.sum(prod, axis=0, keepdims=True)
        acc_p[...] += jnp.sum(probs_m, axis=0, keepdims=True)
        acc_t[...] += jnp.sum(onehot_f, axis=0, keepdims=True)
    else:
        # exact int32 column: col = ((n*Cf + c_sliced)*P + p0 + p) % C (mod-safe)
        c_sliced = cls - (1 if skip_bg else 0)
        p0 = p_id * p_blk
        phase = ((n_id * cf + c_sliced) % C) * (p_total % C) + (p0 % C)
        p_iota = jax.lax.broadcasted_iota(jnp.int32, (C, p_blk), 1)
        col = (phase + p_iota) % C
        for j in range(C):
            sel = col == j
            acc_i[j:j + 1, :] += jnp.sum(
                jnp.where(jnp.logical_and(sel, onehot), probs, 0.0),
                axis=0, keepdims=True)
            acc_p[j:j + 1, :] += jnp.sum(
                jnp.where(jnp.logical_and(sel, keep_row), probs, 0.0),
                axis=0, keepdims=True)
            acc_t[j:j + 1, :] += jnp.sum(
                jnp.where(jnp.logical_and(sel, onehot), 1.0, 0.0),
                axis=0, keepdims=True)

    @pl.when(is_last)
    def _finalize():
        dice_sum = jnp.zeros((1, 1), jnp.float32)
        if fast_path:
            lane_col = jax.lax.broadcasted_iota(jnp.int32, (1, p_blk), 1) % C
            ai, ap, at = acc_i[...], acc_p[...], acc_t[...]
            for j in range(C):
                sel = lane_col == j
                inter = jnp.sum(jnp.where(sel, ai, 0.0), axis=1, keepdims=True)
                s_in = jnp.sum(jnp.where(sel, ap, 0.0), axis=1, keepdims=True)
                s_tg = jnp.sum(jnp.where(sel, at, 0.0), axis=1, keepdims=True)
                dice_sum = dice_sum + (2.0 * inter + smooth) / (s_in + s_tg + smooth)
        else:
            csi = jnp.sum(acc_i[...], axis=1, keepdims=True)   # (C, 1)
            csp = jnp.sum(acc_p[...], axis=1, keepdims=True)
            cst = jnp.sum(acc_t[...], axis=1, keepdims=True)
            for j in range(C):
                dice_sum = dice_sum + (2.0 * csi[j:j + 1] + smooth) / (
                    csp[j:j + 1] + cst[j:j + 1] + smooth)
        o_ref[...] = 1.0 - dice_sum / C


def _pick_pblk(P, C):
    """Largest 128-aligned lane tile that divides P and stays a few MiB in VMEM."""
    cap = max(512, min(32768, (2 << 20) // (4 * max(C, 1))))
    if P <= cap or P % 128 != 0:
        return P
    d = P // 128
    best_any, best_fast = 128, 0
    for mult in range(1, d + 1):
        pb = 128 * mult
        if pb > cap:
            break
        if d % mult == 0:
            best_any = pb
            if pb % C == 0:
                best_fast = pb
    return best_fast if best_fast else best_any


def multiclass_dice_loss(inputs, targets, num_classes, smooth=1e-6, skip_bg=True):
    """Pallas implementation of MultiClassDiceLoss.forward (inputs NCHW logits)."""
    N, C, H, W = inputs.shape
    assert C == num_classes
    Cf = C - 1 if skip_bg else C
    P = H * W
    # torch's .reshape(-1, num_classes) requires this divisibility too.
    assert (N * Cf * P) % C == 0, "total element count must be divisible by num_classes"

    x = inputs.reshape(N, C, P)                          # lane-dense: spatial on lanes
    t = targets.astype(jnp.int32).reshape(N, 1, P)

    p_blk = _pick_pblk(P, C)
    fast = (P % C == 0) and (p_blk % C == 0)
    acc_rows = 1 if fast else C
    grid = (N, P // p_blk)

    kernel = functools.partial(
        _dice_loss_kernel, num_classes=C, cf=Cf, smooth=float(smooth),
        skip_bg=bool(skip_bg), p_total=P, p_blk=p_blk, fast_path=fast)

    out = pl.pallas_call(
        kernel,
        out_shape=jax.ShapeDtypeStruct((1, 1), jnp.float32),
        grid_spec=pltpu.PrefetchScalarGridSpec(
            num_scalar_prefetch=0,
            grid=grid,
            in_specs=[
                pl.BlockSpec((1, C, p_blk), lambda n, p: (n, 0, p)),   # logits tile
                pl.BlockSpec((1, 1, p_blk), lambda n, p: (n, 0, p)),   # target tile
            ],
            out_specs=pl.BlockSpec((1, 1), lambda n, p: (0, 0)),       # scalar loss
            scratch_shapes=[
                pltpu.VMEM((acc_rows, p_blk), jnp.float32),   # intersection partials
                pltpu.VMEM((acc_rows, p_blk), jnp.float32),   # softmax-prob partials
                pltpu.VMEM((acc_rows, p_blk), jnp.float32),   # one-hot partials
            ],
        ),
        compiler_params=pltpu.CompilerParams(
            dimension_semantics=("arbitrary", "arbitrary"),
            vmem_limit_bytes=32 * 1024 * 1024,
        ),
    )(x, t)
    return out[0, 0]


def _reference_dice_loss(inputs, targets, num_classes, smooth=1e-6, skip_bg=True):
    """Pure-JAX transliteration of the PyTorch module (for verification)."""
    p = jax.nn.softmax(inputs, axis=1)
    oh = jax.nn.one_hot(targets, num_classes, dtype=jnp.float32)       # (N,H,W,C)
    oh = jnp.transpose(oh, (0, 3, 1, 2))                               # (N,C,H,W)
    if skip_bg:
        p = p[:, 1:]
        oh = oh[:, 1:]
    p = p.reshape(-1, num_classes)
    oh = oh.reshape(-1, num_classes)
    inter = (p * oh).sum(axis=0)
    union = p.sum(axis=0) + oh.sum(axis=0)
    dice = (2.0 * inter + smooth) / (union + smooth)
    return 1.0 - dice.mean()


if __name__ == "__main__":
    # Small shapes consistent with the module: batch=2, num_classes=4, 16x16 spatial.
    N, C, H, W = 2, 4, 16, 16
    key = jax.random.PRNGKey(0)
    kx, kt = jax.random.split(key)
    inputs = jax.random.normal(kx, (N, C, H, W), dtype=jnp.float32)     # logits, NCHW
    targets = jax.random.randint(kt, (N, H, W), 0, C, dtype=jnp.int32)  # class ids

    loss = multiclass_dice_loss(inputs, targets, num_classes=C)
    loss = jax.block_until_ready(loss)

    ref = _reference_dice_loss(inputs, targets, num_classes=C)
    np.testing.assert_allclose(np.asarray(loss), np.asarray(ref), rtol=1e-5, atol=1e-5)

    print("KERNEL_OK")
</pallas_src>

<mosaic_0001>
module attributes {stable_mosaic.version = 11 : i64} {
  func.func @_dice_loss_kernel(%arg0: i32, %arg1: i32, %arg2: memref<1x4x256xf32, #tpu.memory_space<vmem>>, %arg3: memref<1x1x256xi32, #tpu.memory_space<vmem>>, %arg4: memref<1x1xf32, #tpu.memory_space<vmem>>, %arg5: memref<1x256xf32, #tpu.memory_space<vmem>>, %arg6: memref<1x256xf32, #tpu.memory_space<vmem>>, %arg7: memref<1x256xf32, #tpu.memory_space<vmem>>) attributes {dimension_semantics = [#tpu.dimension_semantics<arbitrary>, #tpu.dimension_semantics<arbitrary>], iteration_bounds = array<i64: 2, 1>, scalar_prefetch = 0 : i64, scratch_operands = 3 : i64, tpu.core_type = #tpu.core_type<tc>, window_params = [{transform_indices = @transform_0, window_bounds = array<i64: 1, 4, 256>}, {transform_indices = @transform_1, window_bounds = array<i64: 1, 1, 256>}, {pipeline_mode = #tpu.pipeline_mode<synchronous>, transform_indices = @transform_2, window_bounds = array<i64: 1, 1>}]} {
    %c0_i32 = arith.constant 0 : i32
    %0 = arith.cmpi eq, %arg0, %c0_i32 : i32
    %c0_i32_0 = arith.constant 0 : i32
    %1 = arith.cmpi eq, %arg1, %c0_i32_0 : i32
    %2 = arith.andi %0, %1 : i1
    %c1_i32 = arith.constant 1 : i32
    %3 = arith.cmpi eq, %arg0, %c1_i32 : i32
    %c0_i32_1 = arith.constant 0 : i32
    %4 = arith.cmpi eq, %arg1, %c0_i32_1 : i32
    %5 = arith.andi %3, %4 : i1
    %6 = arith.extui %2 : i1 to i32
    %c0_i32_2 = arith.constant 0 : i32
    %7 = arith.cmpi ne, %6, %c0_i32_2 : i32
    scf.if %7 {
      %cst_28 = arith.constant 0.000000e+00 : f32
      %51 = vector.broadcast %cst_28 : f32 to vector<1x256xf32>
      %c0_29 = arith.constant 0 : index
      %c0_30 = arith.constant 0 : index
      %52 = vector.load %arg5[%c0_29, %c0_30] : memref<1x256xf32, #tpu.memory_space<vmem>>, vector<1x256xf32>
      tpu.vector_store %arg5[%c0_29, %c0_30], %51 {strides = array<i32>} : memref<1x256xf32, #tpu.memory_space<vmem>>, vector<1x256xf32>,
      %cst_31 = arith.constant 0.000000e+00 : f32
      %53 = vector.broadcast %cst_31 : f32 to vector<1x256xf32>
      %c0_32 = arith.constant 0 : index
      %c0_33 = arith.constant 0 : index
      %54 = vector.load %arg6[%c0_32, %c0_33] : memref<1x256xf32, #tpu.memory_space<vmem>>, vector<1x256xf32>
      tpu.vector_store %arg6[%c0_32, %c0_33], %53 {strides = array<i32>} : memref<1x256xf32, #tpu.memory_space<vmem>>, vector<1x256xf32>,
      %cst_34 = arith.constant 0.000000e+00 : f32
      %55 = vector.broadcast %cst_34 : f32 to vector<1x256xf32>
      %c0_35 = arith.constant 0 : index
      %c0_36 = arith.constant 0 : index
      %56 = vector.load %arg7[%c0_35, %c0_36] : memref<1x256xf32, #tpu.memory_space<vmem>>, vector<1x256xf32>
      tpu.vector_store %arg7[%c0_35, %c0_36], %55 {strides = array<i32>} : memref<1x256xf32, #tpu.memory_space<vmem>>, vector<1x256xf32>,
    } else {
    }
    %c0 = arith.constant 0 : index
    %c0_3 = arith.constant 0 : index
    %c0_4 = arith.constant 0 : index
    %8 = vector.load %arg2[%c0, %c0_3, %c0_4] : memref<1x4x256xf32, #tpu.memory_space<vmem>>, vector<1x4x256xf32>
    %9 = vector.shape_cast %8 : vector<1x4x256xf32> to vector<4x256xf32>
    %c0_5 = arith.constant 0 : index
    %c0_6 = arith.constant 0 : index
    %c0_7 = arith.constant 0 : index
    %10 = vector.load %arg3[%c0_5, %c0_6, %c0_7] : memref<1x1x256xi32, #tpu.memory_space<vmem>>, vector<1x1x256xi32>
    %11 = vector.shape_cast %10 : vector<1x1x256xi32> to vector<1x256xi32>
    %cst = arith.constant dense<0xFF800000> : vector<256xf32>
    %12 = vector.multi_reduction <maximumf>, %9, %cst [0] : vector<4x256xf32> to vector<256xf32>
    %13 = vector.shape_cast %12 : vector<256xf32> to vector<1x256xf32>
    %14 = vector.broadcast %13 : vector<1x256xf32> to vector<4x256xf32>
    %15 = arith.subf %9, %14 : vector<4x256xf32>
    %16 = math.exp %15 : vector<4x256xf32>
    %cst_8 = arith.constant dense<0.000000e+00> : vector<256xf32>
    %17 = vector.multi_reduction <add>, %16, %cst_8 [0] : vector<4x256xf32> to vector<256xf32>
    %18 = vector.shape_cast %17 : vector<256xf32> to vector<1x256xf32>
    %19 = tpu.reciprocal %18 : vector<1x256xf32> -> vector<1x256xf32>
    %20 = vector.broadcast %19 : vector<1x256xf32> to vector<4x256xf32>
    %21 = arith.mulf %16, %20 : vector<4x256xf32>
    %22 = tpu.iota {dimensions = array<i32: 0>} : vector<4x256xi32>
    %c1_i32_9 = arith.constant 1 : i32
    %23 = vector.broadcast %c1_i32_9 : i32 to vector<4x256xi32>
    %24 = arith.cmpi sge, %22, %23 : vector<4x256xi32>
    %25 = vector.broadcast %11 : vector<1x256xi32> to vector<4x256xi32>
    %26 = arith.cmpi eq, %25, %22 : vector<4x256xi32>
    %27 = arith.andi %26, %24 : vector<4x256xi1>
    %cst_10 = arith.constant 0.000000e+00 : f32
    %28 = vector.broadcast %cst_10 : f32 to vector<4x256xf32>
    %29 = arith.select %24, %21, %28 : vector<4x256xi1>, vector<4x256xf32>
    %cst_11 = arith.constant 0.000000e+00 : f32
    %30 = vector.broadcast %cst_11 : f32 to vector<4x256xf32>
    %31 = arith.select %27, %21, %30 : vector<4x256xi1>, vector<4x256xf32>
    %32 = arith.extui %27 : vector<4x256xi1> to vector<4x256xi32>
    %33 = arith.sitofp %32 : vector<4x256xi32> to vector<4x256xf32>
    %c0_12 = arith.constant 0 : index
    %c0_13 = arith.constant 0 : index
    %34 = vector.load %arg5[%c0_12, %c0_13] : memref<1x256xf32, #tpu.memory_space<vmem>>, vector<1x256xf32>
    %cst_14 = arith.constant dense<0.000000e+00> : vector<256xf32>
    %35 = vector.multi_reduction <add>, %31, %cst_14 [0] : vector<4x256xf32> to vector<256xf32>
    %36 = vector.shape_cast %35 : vector<256xf32> to vector<1x256xf32>
    %37 = arith.addf %34, %36 : vector<1x256xf32>
    %c0_15 = arith.constant 0 : index
    %c0_16 = arith.constant 0 : index
    %38 = vector.load %arg5[%c0_15, %c0_16] : memref<1x256xf32, #tpu.memory_space<vmem>>, vector<1x256xf32>
    tpu.vector_store %arg5[%c0_15, %c0_16], %37 {strides = array<i32>} : memref<1x256xf32, #tpu.memory_space<vmem>>, vector<1x256xf32>,
    %c0_17 = arith.constant 0 : index
    %c0_18 = arith.constant 0 : index
    %39 = vector.load %arg6[%c0_17, %c0_18] : memref<1x256xf32, #tpu.memory_space<vmem>>, vector<1x256xf32>
    %cst_19 = arith.constant dense<0.000000e+00> : vector<256xf32>
    %40 = vector.multi_reduction <add>, %29, %cst_19 [0] : vector<4x256xf32> to vector<256xf32>
    %41 = vector.shape_cast %40 : vector<256xf32> to vector<1x256xf32>
    %42 = arith.addf %39, %41 : vector<1x256xf32>
    %c0_20 = arith.constant 0 : index
    %c0_21 = arith.constant 0 : index
    %43 = vector.load %arg6[%c0_20, %c0_21] : memref<1x256xf32, #tpu.memory_space<vmem>>, vector<1x256xf32>
    tpu.vector_store %arg6[%c0_20, %c0_21], %42 {strides = array<i32>} : memref<1x256xf32, #tpu.memory_space<vmem>>, vector<1x256xf32>,
    %c0_22 = arith.constant 0 : index
    %c0_23 = arith.constant 0 : index
    %44 = vector.load %arg7[%c0_22, %c0_23] : memref<1x256xf32, #tpu.memory_space<vmem>>, vector<1x256xf32>
    %cst_24 = arith.constant dense<0.000000e+00> : vector<256xf32>
    %45 = vector.multi_reduction <add>, %33, %cst_24 [0] : vector<4x256xf32> to vector<256xf32>
    %46 = vector.shape_cast %45 : vector<256xf32> to vector<1x256xf32>
    %47 = arith.addf %44, %46 : vector<1x256xf32>
    %c0_25 = arith.constant 0 : index
    %c0_26 = arith.constant 0 : index
    %48 = vector.load %arg7[%c0_25, %c0_26] : memref<1x256xf32, #tpu.memory_space<vmem>>, vector<1x256xf32>
    tpu.vector_store %arg7[%c0_25, %c0_26], %47 {strides = array<i32>} : memref<1x256xf32, #tpu.memory_space<vmem>>, vector<1x256xf32>,
    %49 = arith.extui %5 : i1 to i32
    %c0_i32_27 = arith.constant 0 : i32
    %50 = arith.cmpi ne, %49, %c0_i32_27 : i32
    scf.if %50 {
      %cst_28 = arith.constant 0.000000e+00 : f32
      %51 = vector.broadcast %cst_28 : f32 to vector<1x1xf32>
      %52 = tpu.iota {dimensions = array<i32: 1>} : vector<1x256xi32>
      %c4_i32 = arith.constant 4 : i32
      %c0_i32_29 = arith.constant 0 : i32
      %53 = arith.cmpi eq, %c4_i32, %c0_i32_29 : i32
      %c1_i32_30 = arith.constant 1 : i32
      %54 = arith.select %53, %c1_i32_30, %c4_i32 : i32
      %55 = vector.broadcast %54 : i32 to vector<1x256xi32>
      %56 = arith.remsi %52, %55 : vector<1x256xi32>
      %c0_i32_31 = arith.constant 0 : i32
      %57 = vector.broadcast %c0_i32_31 : i32 to vector<1x256xi32>
      %58 = arith.cmpi ne, %56, %57 : vector<1x256xi32>
      %c0_i32_32 = arith.constant 0 : i32
      %59 = vector.broadcast %c0_i32_32 : i32 to vector<1x256xi32>
      %60 = arith.cmpi slt, %56, %59 : vector<1x256xi32>
      %c0_i32_33 = arith.constant 0 : i32
      %61 = arith.cmpi slt, %54, %c0_i32_33 : i32
      %62 = vector.broadcast %61 : i1 to vector<1x256xi1>
      %63 = vector.broadcast %62 : vector<1x256xi1> to vector<1x256xi1>
      %64 = arith.xori %60, %63 : vector<1x256xi1>
      %65 = arith.andi %64, %58 : vector<1x256xi1>
      %66 = vector.broadcast %54 : i32 to vector<1x256xi32>
      %67 = arith.addi %56, %66 : vector<1x256xi32>
      %68 = arith.select %65, %67, %56 : vector<1x256xi1>, vector<1x256xi32>
      %c0_34 = arith.constant 0 : index
      %c0_35 = arith.constant 0 : index
      %69 = vector.load %arg5[%c0_34, %c0_35] : memref<1x256xf32, #tpu.memory_space<vmem>>, vector<1x256xf32>
      %c0_36 = arith.constant 0 : index
      %c0_37 = arith.constant 0 : index
      %70 = vector.load %arg6[%c0_36, %c0_37] : memref<1x256xf32, #tpu.memory_space<vmem>>, vector<1x256xf32>
      %c0_38 = arith.constant 0 : index
      %c0_39 = arith.constant 0 : index
      %71 = vector.load %arg7[%c0_38, %c0_39] : memref<1x256xf32, #tpu.memory_space<vmem>>, vector<1x256xf32>
      %c0_i32_40 = arith.constant 0 : i32
      %72 = vector.broadcast %c0_i32_40 : i32 to vector<1x256xi32>
      %73 = arith.cmpi eq, %68, %72 : vector<1x256xi32>
      %cst_41 = arith.constant 0.000000e+00 : f32
      %74 = vector.broadcast %cst_41 : f32 to vector<1x256xf32>
      %75 = arith.select %73, %69, %74 : vector<1x256xi1>, vector<1x256xf32>
      %cst_42 = arith.constant dense<0.000000e+00> : vector<1xf32>
      %76 = vector.multi_reduction <add>, %75, %cst_42 [1] : vector<1x256xf32> to vector<1xf32>
      %77 = vector.shape_cast %76 : vector<1xf32> to vector<1x1xf32>
      %cst_43 = arith.constant 0.000000e+00 : f32
      %78 = vector.broadcast %cst_43 : f32 to vector<1x256xf32>
      %79 = arith.select %73, %70, %78 : vector<1x256xi1>, vector<1x256xf32>
      %cst_44 = arith.constant dense<0.000000e+00> : vector<1xf32>
      %80 = vector.multi_reduction <add>, %79, %cst_44 [1] : vector<1x256xf32> to vector<1xf32>
      %81 = vector.shape_cast %80 : vector<1xf32> to vector<1x1xf32>
      %cst_45 = arith.constant 0.000000e+00 : f32
      %82 = vector.broadcast %cst_45 : f32 to vector<1x256xf32>
      %83 = arith.select %73, %71, %82 : vector<1x256xi1>, vector<1x256xf32>
      %cst_46 = arith.constant dense<0.000000e+00> : vector<1xf32>
      %84 = vector.multi_reduction <add>, %83, %cst_46 [1] : vector<1x256xf32> to vector<1xf32>
      %85 = vector.shape_cast %84 : vector<1xf32> to vector<1x1xf32>
      %cst_47 = arith.constant 2.000000e+00 : f32
      %86 = vector.broadcast %cst_47 : f32 to vector<1x1xf32>
      %87 = arith.mulf %86, %77 : vector<1x1xf32>
      %cst_48 = arith.constant 9.99999997E-7 : f32
      %88 = vector.broadcast %cst_48 : f32 to vector<1x1xf32>
      %89 = arith.addf %87, %88 : vector<1x1xf32>
      %90 = arith.addf %81, %85 : vector<1x1xf32>
      %cst_49 = arith.constant 9.99999997E-7 : f32
      %91 = vector.broadcast %cst_49 : f32 to vector<1x1xf32>
      %92 = arith.addf %90, %91 : vector<1x1xf32>
      %93 = arith.divf %89, %92 : vector<1x1xf32>
      %94 = arith.addf %51, %93 : vector<1x1xf32>
      %c1_i32_50 = arith.constant 1 : i32
      %95 = vector.broadcast %c1_i32_50 : i32 to vector<1x256xi32>
      %96 = arith.cmpi eq, %68, %95 : vector<1x256xi32>
      %cst_51 = arith.constant 0.000000e+00 : f32
      %97 = vector.broadcast %cst_51 : f32 to vector<1x256xf32>
      %98 = arith.select %96, %69, %97 : vector<1x256xi1>, vector<1x256xf32>
      %cst_52 = arith.constant dense<0.000000e+00> : vector<1xf32>
      %99 = vector.multi_reduction <add>, %98, %cst_52 [1] : vector<1x256xf32> to vector<1xf32>
      %100 = vector.shape_cast %99 : vector<1xf32> to vector<1x1xf32>
      %cst_53 = arith.constant 0.000000e+00 : f32
      %101 = vector.broadcast %cst_53 : f32 to vector<1x256xf32>
      %102 = arith.select %96, %70, %101 : vector<1x256xi1>, vector<1x256xf32>
      %cst_54 = arith.constant dense<0.000000e+00> : vector<1xf32>
      %103 = vector.multi_reduction <add>, %102, %cst_54 [1] : vector<1x256xf32> to vector<1xf32>
      %104 = vector.shape_cast %103 : vector<1xf32> to vector<1x1xf32>
      %cst_55 = arith.constant 0.000000e+00 : f32
      %105 = vector.broadcast %cst_55 : f32 to vector<1x256xf32>
      %106 = arith.select %96, %71, %105 : vector<1x256xi1>, vector<1x256xf32>
      %cst_56 = arith.constant dense<0.000000e+00> : vector<1xf32>
      %107 = vector.multi_reduction <add>, %106, %cst_56 [1] : vector<1x256xf32> to vector<1xf32>
      %108 = vector.shape_cast %107 : vector<1xf32> to vector<1x1xf32>
      %cst_57 = arith.constant 2.000000e+00 : f32
      %109 = vector.broadcast %cst_57 : f32 to vector<1x1xf32>
      %110 = arith.mulf %109, %100 : vector<1x1xf32>
      %cst_58 = arith.constant 9.99999997E-7 : f32
      %111 = vector.broadcast %cst_58 : f32 to vector<1x1xf32>
      %112 = arith.addf %110, %111 : vector<1x1xf32>
      %113 = arith.addf %104, %108 : vector<1x1xf32>
      %cst_59 = arith.constant 9.99999997E-7 : f32
      %114 = vector.broadcast %cst_59 : f32 to vector<1x1xf32>
      %115 = arith.addf %113, %114 : vector<1x1xf32>
      %116 = arith.divf %112, %115 : vector<1x1xf32>
      %117 = arith.addf %94, %116 : vector<1x1xf32>
      %c2_i32 = arith.constant 2 : i32
      %118 = vector.broadcast %c2_i32 : i32 to vector<1x256xi32>
      %119 = arith.cmpi eq, %68, %118 : vector<1x256xi32>
      %cst_60 = arith.constant 0.000000e+00 : f32
      %120 = vector.broadcast %cst_60 : f32 to vector<1x256xf32>
      %121 = arith.select %119, %69, %120 : vector<1x256xi1>, vector<1x256xf32>
      %cst_61 = arith.constant dense<0.000000e+00> : vector<1xf32>
      %122 = vector.multi_reduction <add>, %121, %cst_61 [1] : vector<1x256xf32> to vector<1xf32>
      %123 = vector.shape_cast %122 : vector<1xf32> to vector<1x1xf32>
      %cst_62 = arith.constant 0.000000e+00 : f32
      %124 = vector.broadcast %cst_62 : f32 to vector<1x256xf32>
      %125 = arith.select %119, %70, %124 : vector<1x256xi1>, vector<1x256xf32>
      %cst_63 = arith.constant dense<0.000000e+00> : vector<1xf32>
      %126 = vector.multi_reduction <add>, %125, %cst_63 [1] : vector<1x256xf32> to vector<1xf32>
      %127 = vector.shape_cast %126 : vector<1xf32> to vector<1x1xf32>
      %cst_64 = arith.constant 0.000000e+00 : f32
      %128 = vector.broadcast %cst_64 : f32 to vector<1x256xf32>
      %129 = arith.select %119, %71, %128 : vector<1x256xi1>, vector<1x256xf32>
      %cst_65 = arith.constant dense<0.000000e+00> : vector<1xf32>
      %130 = vector.multi_reduction <add>, %129, %cst_65 [1] : vector<1x256xf32> to vector<1xf32>
      %131 = vector.shape_cast %130 : vector<1xf32> to vector<1x1xf32>
      %cst_66 = arith.constant 2.000000e+00 : f32
      %132 = vector.broadcast %cst_66 : f32 to vector<1x1xf32>
      %133 = arith.mulf %132, %123 : vector<1x1xf32>
      %cst_67 = arith.constant 9.99999997E-7 : f32
      %134 = vector.broadcast %cst_67 : f32 to vector<1x1xf32>
      %135 = arith.addf %133, %134 : vector<1x1xf32>
      %136 = arith.addf %127, %131 : vector<1x1xf32>
      %cst_68 = arith.constant 9.99999997E-7 : f32
      %137 = vector.broadcast %cst_68 : f32 to vector<1x1xf32>
      %138 = arith.addf %136, %137 : vector<1x1xf32>
      %139 = arith.divf %135, %138 : vector<1x1xf32>
      %140 = arith.addf %117, %139 : vector<1x1xf32>
      %c3_i32 = arith.constant 3 : i32
      %141 = vector.broadcast %c3_i32 : i32 to vector<1x256xi32>
      %142 = arith.cmpi eq, %68, %141 : vector<1x256xi32>
      %cst_69 = arith.constant 0.000000e+00 : f32
      %143 = vector.broadcast %cst_69 : f32 to vector<1x256xf32>
      %144 = arith.select %142, %69, %143 : vector<1x256xi1>, vector<1x256xf32>
      %cst_70 = arith.constant dense<0.000000e+00> : vector<1xf32>
      %145 = vector.multi_reduction <add>, %144, %cst_70 [1] : vector<1x256xf32> to vector<1xf32>
      %146 = vector.shape_cast %145 : vector<1xf32> to vector<1x1xf32>
      %cst_71 = arith.constant 0.000000e+00 : f32
      %147 = vector.broadcast %cst_71 : f32 to vector<1x256xf32>
      %148 = arith.select %142, %70, %147 : vector<1x256xi1>, vector<1x256xf32>
      %cst_72 = arith.constant dense<0.000000e+00> : vector<1xf32>
      %149 = vector.multi_reduction <add>, %148, %cst_72 [1] : vector<1x256xf32> to vector<1xf32>
      %150 = vector.shape_cast %149 : vector<1xf32> to vector<1x1xf32>
      %cst_73 = arith.constant 0.000000e+00 : f32
      %151 = vector.broadcast %cst_73 : f32 to vector<1x256xf32>
      %152 = arith.select %142, %71, %151 : vector<1x256xi1>, vector<1x256xf32>
      %cst_74 = arith.constant dense<0.000000e+00> : vector<1xf32>
      %153 = vector.multi_reduction <add>, %152, %cst_74 [1] : vector<1x256xf32> to vector<1xf32>
      %154 = vector.shape_cast %153 : vector<1xf32> to vector<1x1xf32>
      %cst_75 = arith.constant 2.000000e+00 : f32
      %155 = vector.broadcast %cst_75 : f32 to vector<1x1xf32>
      %156 = arith.mulf %155, %146 : vector<1x1xf32>
      %cst_76 = arith.constant 9.99999997E-7 : f32
      %157 = vector.broadcast %cst_76 : f32 to vector<1x1xf32>
      %158 = arith.addf %156, %157 : vector<1x1xf32>
      %159 = arith.addf %150, %154 : vector<1x1xf32>
      %cst_77 = arith.constant 9.99999997E-7 : f32
      %160 = vector.broadcast %cst_77 : f32 to vector<1x1xf32>
      %161 = arith.addf %159, %160 : vector<1x1xf32>
      %162 = arith.divf %158, %161 : vector<1x1xf32>
      %163 = arith.addf %140, %162 : vector<1x1xf32>
      %cst_78 = arith.constant 4.000000e+00 : f32
      %164 = vector.broadcast %cst_78 : f32 to vector<1x1xf32>
      %165 = arith.divf %163, %164 : vector<1x1xf32>
      %cst_79 = arith.constant 1.000000e+00 : f32
      %166 = vector.broadcast %cst_79 : f32 to vector<1x1xf32>
      %167 = arith.subf %166, %165 : vector<1x1xf32>
      %c0_80 = arith.constant 0 : index
      %c0_81 = arith.constant 0 : index
      %168 = vector.load %arg4[%c0_80, %c0_81] : memref<1x1xf32, #tpu.memory_space<vmem>>, vector<1x1xf32>
      tpu.vector_store %arg4[%c0_80, %c0_81], %167 {strides = array<i32>} : memref<1x1xf32, #tpu.memory_space<vmem>>, vector<1x1xf32>,
    } else {
    }
    return
  }
  func.func @transform_0(%arg0: i32, %arg1: i32) -> (i32, i32, i32) {
    %c0_i32 = arith.constant 0 : i32
    %c0_i32_0 = arith.constant 0 : i32
    return %arg0, %c0_i32, %arg1 : i32, i32, i32
  }
  func.func @transform_1(%arg0: i32, %arg1: i32) -> (i32, i32, i32) {
    %c0_i32 = arith.constant 0 : i32
    %c0_i32_0 = arith.constant 0 : i32
    return %arg0, %c0_i32, %arg1 : i32, i32, i32
  }
  func.func @transform_2(%arg0: i32, %arg1: i32) -> (i32, i32) {
    %c0_i32 = arith.constant 0 : i32
    %c0_i32_0 = arith.constant 0 : i32
    %c0_i32_1 = arith.constant 0 : i32
    return %c0_i32, %c0_i32_0 : i32, i32
  }
}

</mosaic_0001>

<bundles_post_ra>
// kernel: tpu_custom_call.1
= control target key start
LH: loop header
LB: loop body
LE: loop exit
PB: predicated region body
PF: predicated region fallthrough
CT: control target
= control target key end

     0   :  { %7 = vsyncpa [#allocation6], 0  ;;  %s1321_s0 = inlined_call_operand.hbm [shape: f32[2,4,256], index: 0, kind: input, shape index: {}]   ;;  %s1322_s1 = inlined_call_operand.hbm [shape: s32[2,1,256], index: 1, kind: input, shape index: {}]   ;;  %s1323_s2 = inlined_call_operand.hbm [shape: f32[1,1], index: 2, kind: output, shape index: {}]  }
   0x1   :  { %9 = vsyncpa [#allocation6 + $0x1], 0 }
   0x2   :  { %10 = vsyncpa [#allocation9], 0 }
   0x3   :  { %12 = vsyncpa [#allocation9 + $0x1], 0 }
   0x4   :  { %13 = vsyncpa [#allocation7], 0  ;;  %s1012_s9 = smov 0   ;;  %s1014_s10 = smov 0  }
   0x5   :  { %s1016_s11 = smov 0   ;;  %s1018_s12 = smov 0  }
   0x6   :  { %s1020_s13 = smov 0   ;;  %s1022_s14 = smov 0  }
   0x7 LB: > { %s737_s15 = sadd.s32 4294967295, %s991_s14   ;;  %s31_s16 = sadd.s32 1, %s987_s13  ;;  %s991_s14 = sphi %s1022_s14, %s19_s14   ;;  %s987_s13 = sphi %s1020_s13, %s1341_s13   ;;  %s983_s12 = sphi %s1018_s12, %s1340_s12   ;;  %s979_s11 = sphi %s1016_s11, %s1339_s11   ;;  %s975_s10 = sphi %s1014_s10, %s1338_s10   ;;  %s971_s9 = sphi %s1012_s9, %s1337_s9  }
   0x8   : > { %p33_p0 = scmp.ge.s32.totalorder %s31_s16, 2  ;;  %s40_s17 = sadd.s32 1, %s979_s11 }
   0x9   : > { %p47_p1 = scmp.ne.s32.totalorder %s979_s11, %s975_s10  ;;  %p48_p2 = scmp.eq.s32.totalorder %s991_s14, 0 }
   0xa   : > { %s1343_s16 = smov (%p33_p0, %s31_s16), 0  ;;  %p53_p4 = scmp.ne.s32.totalorder %s975_s10, %s971_s9 }
   0xb   : > { %p1048_p3 = por %p48_p2, %p47_p1  ;;  %s35_s19 = ssub.s32 %s987_s13, %s1343_s16 }
   0xc   : > { %p54_p5 = scmp.eq.s32.totalorder %s737_s15, 0  ;;  %p38_p6 = scmp.eq.s32.totalorder %s35_s19, 0 }
   0xd   : > { %p774_p8 = scmp.lt.s32.totalorder %s991_s14, 2  ;;  %s126_s22 = sand.u32 1, %s979_s11  }
   0xe   : > { %p1057_p7 = por %p54_p5, %p53_p4  ;;  %s756_s23 = sshll.u32 %s987_s13, 3 }
   0xf   : > { %s1063_s21 = scalar_select %p38_p6, %s979_s11, %s40_s17  }
  0x10   : > { %s740_s24 = sshll.u32 %s126_s22, 3  ;;  %s137_s27 = scalar_lea.hbm %s1321_s0, %s756_s23 }
  0x11   : > { %s139_s28 = sshll.u32 %s137_s27, 4  ;;  %s130_s29 = scalar_lea.vmem [#allocation5], %s740_s24  ;;  %s140_s28 = int_to_ptr.hbm [resolvable:$true] %s139_s28 }
  0x12   : > { %s141_s30 = sshll.u32 %s130_s29, 4  ;;  %p1072_p9 = pnand %p774_p8, %p1048_p3  ;;  %s142_s30 = int_to_ptr.vmem [resolvable:$true] %s141_s30 }
  0x13   : > { %p745_p10 = scmp.ge.s32.totalorder %s991_s14, 1  ;;  %p167_p11 = scmp.lt.s32.totalorder %s991_s14, 3 }
  0x14   : > { %s743_s4 = sshll.u32 %s126_s22, 1  ;;  %s127_s5 = scalar_lea.sflag [#allocation6], %s126_s22 }
  0x15   : > { %770 = dma.hbm_to_vmem [thread:$0]  (!%p1072_p9), %s140_s28, 128, %s142_s30, %s127_s5  }
  0x16   : > { %p168_p12 = pnand %p745_p10, %p167_p11  ;;  %s744_s6 = sshll.u32 %s987_s13, 1 }
  0x17   : > { %s152_s7 = scalar_lea.vmem [#allocation8], %s743_s4  ;;  %s158_s18 = scalar_lea.hbm %s1322_s1, %s744_s6 }
  0x18   : > { %s162_s8 = sshll.u32 %s152_s7, 4  ;;  %s160_s19 = sshll.u32 %s158_s18, 4  ;;  %s163_s8 = int_to_ptr.vmem [resolvable:$true] %s162_s8  ;;  %s161_s19 = int_to_ptr.hbm [resolvable:$true] %s160_s19 }
  0x19   : > { %s149_s23 = scalar_lea.sflag [#allocation9], %s126_s22  ;;  %171 = sbr.rel (%p168_p12) target bundleno = 332 (0x14c), region = 28 }
  0x1a   : > { %773 = dma.hbm_to_vmem [thread:$0]  (!%p1072_p9), %s161_s19, 32, %s163_s8, %s149_s23  }
  0x1b   : > { %s173_s24 = sand.u32 (!%p168_p12), 1, %s975_s10  }
  0x1c   : > { %s746_s25 = sshll.u32 (!%p168_p12), %s173_s24, 3  ;;  %s174_s26 = scalar_lea.sflag (!%p168_p12), [#allocation6], %s173_s24 }
  0x1d   : > { %s177_s27 = scalar_lea.vmem (!%p168_p12), [#allocation5], %s746_s25 }
  0x1e   : > { %958 = dma.done.wait (%p1057_p7), %s174_s26, 128  }
  0x1f   : > { %960 = vsyncadd (%p1057_p7), %s174_s26, 4294967168  ;;  %s747_s28 = sshll.u32 %s173_s24, 1  ;;  %s184_s29 = scalar_lea.sflag [#allocation9], %s173_s24 }
  0x20   : > { %s1091_s30 = scalar_lea.vmem [#allocation8], %s747_s28 }
  0x21   : > { %962 = dma.done.wait (%p1057_p7), %s184_s29, 32  }
  0x22   : > { %964 = vsyncadd (%p1057_p7), %s184_s29, 4294967264  ;;  %p211_p13 = scmp.eq.s32.totalorder %s983_s12, 0  ;;  %p215_p0 = scmp.eq.s32.totalorder %s983_s12, 1 }
  0x23   : > { %v220_v0 = vlaneseq (%p211_p13)  ;;  %v993_v1 = vmov (%p211_p13), 0.0  }
  0x24   : > { %219 = sbr.rel (!%p211_p13) target bundleno = 41 (0x29), region = 40 }
  0x25   : > { %vm222_vm0 = vcmp.lt.s32.totalorder (%p211_p13), %v220_v0, 256 }
  0x26   : > { %224 = vst.msk [vmem:[#allocation2] sm:$0x3] (%p211_p13), %vm222_vm0, %v993_v1 }
  0x27   : > { %225 = vst.msk [vmem:[#allocation3] sm:$0x3] (%p211_p13), %vm222_vm0, %v993_v1 }
  0x28   : > { %226 = vst.msk [vmem:[#allocation4] sm:$0x3] (%p211_p13), %vm222_vm0, %v993_v1 }
  0x29 PF: > { %v227_v2 = vld [vmem:[%s177_s27] sm:$0xff]  ;;  %vm235_vm1 = vcmask 1043456   ;;  %v312_v38 = vlaneseq  ;;  %v228_v41 = vld [vmem:[%s1091_s30] sm:$0x3]  ;;  %v994_v50 = vmov 0.0   ;;  %vm358_vm15 = vcmask 1040384  }
  0x2a   : > { %230 = vst [vmem:[#allocation1] ss:$2 sm:$0xff] %v227_v2  ;;  %v315_v43 = vperm.slane %v228_v41, 0  ;;  %v316_v44 = vperm.slane %v228_v41, 1 }
  0x2b   : > { %v1109_v42 = vshrl.u32 %v312_v38, 7  ;;  %vm1142_vm0 = vcmp.lt.s32.totalorder %v312_v38, 256 }
  0x2d   : > { %vm314_vm2 = vcmp.ge.s32.totalorder %v1109_v42, 1  ;;  %vm317_vm3 = vcmp.eq.s32.totalorder %v315_v43, %v1109_v42  ;;  %vm318_vm4 = vcmp.eq.s32.totalorder %v316_v44, %v1109_v42 }
  0x2e   : > { %vm1116_vm5 = vmand %vm317_vm3, %vm314_vm2 }
  0x2f   : > { %vm1122_vm6 = vmand %vm318_vm4, %vm314_vm2  ;;  %v750_v51 = vsel %vm1116_vm5, 1.0, %v994_v50 }
  0x30   : > { %v751_v52 = vsel %vm1122_vm6, 1.0, %v994_v50  ;;  %v390_v59 = vsel %vm235_vm1, %v750_v51, 0.0 }
  0x31   : > { %v231_v3 = vld.sshfl [vmem:[#allocation1] sm:$0xff pattern:$0x75316420]  ;;  %v232_v4 = vld.sshfl [vmem:[#allocation1 + $0x8] sm:$0xff pattern:$0x75316420] }
  0x32   : > { %v236_v5 = vsel %vm235_vm1, %v231_v3, -inf  ;;  %v243_v6 = vsel %vm235_vm1, %v232_v4, -inf  ;;  %v397_v54 = vsel %vm235_vm1, %v751_v52, 0.0  ;;  %v391_v61 = vrot.slane %v390_v59, 4 }
  0x33   : > { %v237_v7 = vrot.slane %v236_v5, 4  ;;  %v244_v8 = vrot.slane %v243_v6, 4  ;;  %v398_v56 = vrot.slane %v397_v54, 4 }
  0x34   : > { %v392_v3 = vadd.f32 %v391_v61, %v390_v59  ;;  %v367_v59 = vld [vmem:[#allocation3] sm:$0x3] }
  0x35   : > { %v238_v9 = vmax.f32 %v236_v5, %v237_v7  ;;  %v245_v10 = vmax.f32 %v243_v6, %v244_v8  ;;  %v399_v62 = vadd.f32 %v398_v56, %v397_v54  ;;  %v340_v5 = vld [vmem:[#allocation2] sm:$0x3] }
  0x37   : > { %v239_v11 = vrot.slane %v238_v9, 2  ;;  %v246_v12 = vrot.slane %v245_v10, 2  ;;  %v400_v4 = vrot.slane %v399_v62, 2 }
  0x39   : > { %v240_v13 = vmax.f32 %v238_v9, %v239_v11  ;;  %v247_v14 = vmax.f32 %v245_v10, %v246_v12  ;;  %v393_v9 = vrot.slane %v392_v3, 2  ;;  %v401_v10 = vadd.f32 %v400_v4, %v399_v62 }
  0x3b   : > { %v241_v15 = vrot.slane %v240_v13, 1  ;;  %v248_v16 = vrot.slane %v247_v14, 1 }
  0x3d   : > { %v249_v17 = vmax.f32 %v247_v14, %v248_v16  ;;  %v242_v18 = vmax.f32 %v240_v13, %v241_v15  ;;  %v394_v15 = vadd.f32 %v393_v9, %v392_v3  ;;  %v402_v16 = vrot.slane %v401_v10, 1 }
  0x3f   : > { %v252_v19 = vrot.slane %v249_v17, 4 }
  0x41   : > { %v253_v20 = vsel %vm235_vm1, %v242_v18, %v252_v19  ;;  %v395_v19 = vrot.slane %v394_v15, 1 }
  0x42   : > { %v255_v21 = vsub.f32 %v227_v2, %v253_v20  ;;  %v403_v20 = vadd.f32 %v402_v16, %v401_v10  ;;  %v414_v10 = vand.u32 (%p215_p0), 127, %v312_v38 }
  0x44   : > { %v256_v22 = vmul.f32 1.442695, %v255_v21 }
  0x46   : > { %829 = vpow2.f32 %v256_v22 }
  0x4c   : > { %v1102_v23 = vpop.eup %829 }
  0x4d   : > { %259 = vst [vmem:[#allocation1] ss:$2 sm:$0xff] %v1102_v23 }
  0x54   : > { %v260_v24 = vld.sshfl [vmem:[#allocation1] sm:$0xff pattern:$0x75316420]  ;;  %v261_v25 = vld.sshfl [vmem:[#allocation1 + $0x8] sm:$0xff pattern:$0x75316420] }
  0x55   : > { %v264_v26 = vsel %vm235_vm1, %v260_v24, 0.0  ;;  %v271_v27 = vsel %vm235_vm1, %v261_v25, 0.0  ;;  %v396_v24 = vadd.f32 %v395_v19, %v394_v15  ;;  %v406_v25 = vrot.slane %v403_v20, 7 }
  0x56   : > { %v265_v28 = vrot.slane %v264_v26, 4  ;;  %v272_v29 = vrot.slane %v271_v27, 4  ;;  %v1169_v15 = vand.u32 (%p215_p0), 3, %v414_v10 }
  0x58   : > { %v266_v30 = vadd.f32 %v265_v28, %v264_v26  ;;  %v273_v31 = vadd.f32 %v272_v29, %v271_v27  ;;  %v389_v26 = vld [vmem:[#allocation4] sm:$0x3]  ;;  %v407_v27 = vsel %vm358_vm15, %v396_v24, %v406_v25  ;;  %vm443_vm3 = vcmp.eq.s32.totalorder (%p215_p0), %v1169_v15, 0 }
  0x59   : > { %v409_v28 = vadd.f32 %v407_v27, %v389_v26 }
  0x5a   : > { %v267_v32 = vrot.slane %v266_v30, 2  ;;  %v274_v33 = vrot.slane %v273_v31, 2 }
  0x5b   : > { %410 = vst.msk [vmem:[#allocation4] sm:$0x3] %vm1142_vm0, %v409_v28 }
  0x5c   : > { %v268_v34 = vadd.f32 %v267_v32, %v266_v30  ;;  %v275_v35 = vadd.f32 %v274_v33, %v273_v31 }
  0x5e   : > { %v269_v36 = vrot.slane %v268_v34, 1  ;;  %v276_v37 = vrot.slane %v275_v35, 1 }
  0x60   : > { %v270_v39 = vadd.f32 %v269_v36, %v268_v34  ;;  %v277_v40 = vadd.f32 %v276_v37, %v275_v35 }
  0x62   : > { %831 = vrcp.f32 %v270_v39  ;;  %v303_v58 = vand.u32 2147483648, %v277_v40  ;;  %vm283_vm8 = vweird.f32 %v270_v39  ;;  %v301_v0 = vand.u32 2147483647, %v277_v40 }
  0x63   : > { %833 = vrcp.f32 %v277_v40  ;;  %v289_v2 = vand.u32 2147483648, %v270_v39  ;;  %v287_v6 = vand.u32 2147483647, %v270_v39  ;;  %vm297_vm11 = vweird.f32 %v277_v40 }
  0x64   : > { %v304_v8 = vor.u32 1.1754944e-38, %v303_v58  ;;  %vm302_vm13 = vcmp.eq.f32.partialorder %v301_v0, 8.507059e+37 }
  0x65   : > { %v290_v13 = vor.u32 1.1754944e-38, %v289_v2  ;;  %vm288_vm14 = vcmp.eq.f32.partialorder %v287_v6, 8.507059e+37 }
  0x68   : > { %v832_v46 = vpop.eup %831 }
  0x69   : > { %v834_v48 = vpop.eup %833  ;;  %v279_v49 = vmul.f32 %v832_v46, %v270_v39  ;;  %vm284_vm7 = vweird.f32 %v832_v46 }
  0x6a   : > { %v293_v53 = vmul.f32 %v834_v48, %v277_v40  ;;  %vm298_vm9 = vweird.f32 %v834_v48  ;;  %vm1132_vm10 = vmor %vm283_vm8, %vm284_vm7  ;;  %vm587_vm7 = vcmp.eq.s32.totalorder (%p215_p0), %v1169_v15, 3 }
  0x6b   : > { %v280_v55 = vsub.f32 1.0, %v279_v49  ;;  %vm299_vm12 = vmor %vm297_vm11, %vm298_vm9 }
  0x6c   : > { %v294_v57 = vsub.f32 1.0, %v293_v53 }
  0x6d   : > { %v281_v60 = vmul.f32 %v832_v46, %v280_v55 }
  0x6e   : > { %v295_v63 = vmul.f32 %v834_v48, %v294_v57 }
  0x6f   : > { %v282_v1 = vadd.f32 %v832_v46, %v281_v60 }
  0x70   : > { %v296_v7 = vadd.f32 %v834_v48, %v295_v63 }
  0x71   : > { %v286_v11 = vsel %vm1132_vm10, %v832_v46, %v282_v1 }
  0x72   : > { %v300_v12 = vsel %vm299_vm12, %v834_v48, %v296_v7  ;;  %v291_v18 = vsel %vm288_vm14, %v290_v13, %v286_v11 }
  0x73   : > { %v305_v14 = vsel %vm302_vm13, %v304_v8, %v300_v12  ;;  %v442_v12 = vld [vmem:[#allocation4] sm:$0x3] (%p215_p0) }
  0x74   : > { %v308_v17 = vrot.slane %v305_v14, 4  ;;  %v415_v14 = vadd.s32 (%p215_p0), 128, %v414_v10 }
  0x76   : > { %v309_v21 = vsel %vm235_vm1, %v291_v18, %v308_v17  ;;  %v470_v17 = vperm.slane (%p215_p0), %v442_v12, 0  ;;  %v1171_v18 = vand.u32 (%p215_p0), 3, %v415_v14 }
  0x77   : > { %v311_v22 = vmul.f32 %v1102_v23, %v309_v21  ;;  %v471_v21 = vperm.slane (%p215_p0), %v442_v12, 1 }
  0x78   : > { %vm545_vm4 = vcmp.eq.s32.totalorder (%p215_p0), %v1171_v18, 2  ;;  %vm588_vm8 = vcmp.eq.s32.totalorder (%p215_p0), %v1171_v18, 3 }
  0x79   : > { %322 = vst [vmem:[#allocation1] ss:$2 sm:$0xff] %v311_v22 }
  0x80   : > { %v323_v30 = vld.sshfl [vmem:[#allocation1] sm:$0xff pattern:$0x75316420]  ;;  %v324_v31 = vld.sshfl [vmem:[#allocation1 + $0x8] sm:$0xff pattern:$0x75316420] }
  0x81   : > { %329 = vst [vmem:[#allocation1] ss:$2 sm:$0xff] %v311_v22  ;;  %v327_v23 = vsel %vm314_vm2, %v323_v30, 0.0  ;;  %v328_v32 = vsel %vm314_vm2, %v324_v31, 0.0  ;;  %vm501_vm2 = vcmp.eq.s32.totalorder (%p215_p0), %v1169_v15, 1 }
  0x82   : > { %v368_v33 = vsel %vm235_vm1, %v327_v23, 0.0  ;;  %v375_v34 = vsel %vm235_vm1, %v328_v32, 0.0 }
  0x83   : > { %v369_v35 = vrot.slane %v368_v33, 4  ;;  %v376_v36 = vrot.slane %v375_v34, 4 }
  0x85   : > { %v370_v37 = vadd.f32 %v369_v35, %v368_v33  ;;  %v377_v39 = vadd.f32 %v376_v36, %v375_v34  ;;  %v561_v34 = vsel (%p215_p0), %vm545_vm4, %v471_v21, 0.0  ;;  %v517_v36 = vsel (%p215_p0), %vm501_vm2, %v470_v17, 0.0 }
  0x87   : > { %v371_v40 = vrot.slane %v370_v37, 2  ;;  %v378_v41 = vrot.slane %v377_v39, 2 }
  0x88   : > { %v330_v43 = vld.sshfl [vmem:[#allocation1] sm:$0xff pattern:$0x75316420]  ;;  %v331_v44 = vld.sshfl [vmem:[#allocation1 + $0x8] sm:$0xff pattern:$0x75316420] }
  0x89   : > { %v334_v46 = vsel %vm1116_vm5, %v330_v43, 0.0  ;;  %v335_v48 = vsel %vm1122_vm6, %v331_v44, 0.0  ;;  %v372_v42 = vadd.f32 %v371_v40, %v370_v37  ;;  %v379_v49 = vadd.f32 %v378_v41, %v377_v39 }
  0x8a   : > { %v348_v50 = vsel %vm235_vm1, %v335_v48, 0.0  ;;  %v341_v51 = vsel %vm235_vm1, %v334_v46, 0.0  ;;  %vm544_vm1 = vcmp.eq.s32.totalorder (%p215_p0), %v1169_v15, 2  ;;  %vm502_vm5 = vcmp.eq.s32.totalorder (%p215_p0), %v1171_v18, 1 }
  0x8b   : > { %v349_v52 = vrot.slane %v348_v50, 4  ;;  %v373_v53 = vrot.slane %v372_v42, 1  ;;  %v380_v54 = vrot.slane %v379_v49, 1  ;;  %v342_v55 = vrot.slane %v341_v51, 4 }
  0x8c   : > { %vm444_vm6 = vcmp.eq.s32.totalorder (%p215_p0), %v1171_v18, 0  ;;  %v560_v31 = vsel (%p215_p0), %vm544_vm1, %v470_v17, 0.0  ;;  %v518_v37 = vsel (%p215_p0), %vm502_vm5, %v471_v21, 0.0  ;;  %v474_v41 = vsel (%p215_p0), %vm443_vm3, %v470_v17, 0.0 }
  0x8d   : > { %v381_v56 = vadd.f32 %v380_v54, %v379_v49  ;;  %v343_v57 = vadd.f32 %v342_v55, %v341_v51  ;;  %v350_v58 = vadd.f32 %v349_v52, %v348_v50  ;;  %v374_v60 = vadd.f32 %v373_v53, %v372_v42 }
  0x8e   : > { %v562_v40 = vsel (%p215_p0), %vm358_vm15, %v560_v31, 0.0  ;;  %v563_v43 = vsel (%p215_p0), %vm358_vm15, %v561_v34, 0.0  ;;  %v519_v44 = vsel (%p215_p0), %vm358_vm15, %v517_v36, 0.0  ;;  %v520_v46 = vsel (%p215_p0), %vm358_vm15, %v518_v37, 0.0 }
  0x8f   : > { %v384_v45 = vrot.slane %v381_v56, 7  ;;  %v344_v61 = vrot.slane %v343_v57, 2  ;;  %v351_v62 = vrot.slane %v350_v58, 2  ;;  %v475_v48 = vsel (%p215_p0), %vm444_vm6, %v471_v21, 0.0 }
  0x90   : > { %v476_v42 = vsel (%p215_p0), %vm358_vm15, %v474_v41, 0.0  ;;  %v477_v49 = vsel (%p215_p0), %vm358_vm15, %v475_v48, 0.0  ;;  %v564_v52 = vadd.f32 (%p215_p0), %v563_v43, %v562_v40  ;;  %v521_v53 = vadd.f32 (%p215_p0), %v520_v46, %v519_v44 }
  0x91   : > { %v385_v47 = vsel %vm358_vm15, %v374_v60, %v384_v45  ;;  %v345_v63 = vadd.f32 %v344_v61, %v343_v57  ;;  %v352_v0 = vadd.f32 %v351_v62, %v350_v58  ;;  %v478_v54 = vadd.f32 (%p215_p0), %v477_v49, %v476_v42 }
  0x92   : > { %v387_v1 = vadd.f32 %v385_v47, %v367_v59  ;;  %v603_v55 = vsel (%p215_p0), %vm587_vm7, %v470_v17, 0.0  ;;  %v604_v56 = vsel (%p215_p0), %vm588_vm8, %v471_v21, 0.0  ;;  %v995_v21 = vmov (%p215_p0), 4.0  }
  0x93   : > { %v346_v2 = vrot.slane %v345_v63, 1  ;;  %v353_v3 = vrot.slane %v352_v0, 1  ;;  %v605_v45 = vsel (%p215_p0), %vm358_vm15, %v603_v55, 0.0  ;;  %v606_v61 = vsel (%p215_p0), %vm358_vm15, %v604_v56, 0.0 }
  0x94   : > { %388 = vst.msk [vmem:[#allocation3] sm:$0x3] %vm1142_vm0, %v387_v1  ;;  %v607_v1 = vadd.f32 (%p215_p0), %v606_v61, %v605_v45  ;;  %835 = vrcp.f32 (%p215_p0), %v995_v21 }
  0x95   : > { %v354_v4 = vadd.f32 %v353_v3, %v352_v0  ;;  %v347_v6 = vadd.f32 %v346_v2, %v345_v63 }
  0x97   : > { %v357_v7 = vrot.slane %v354_v4, 7 }
  0x98   : > { %412 = sbr.rel (!%p215_p0) target bundleno = 326 (0x146), region = 44 }
  0x99   : > { %v359_v8 = vsel %vm358_vm15, %v347_v6, %v357_v7 }
  0x9a   : > { %v361_v9 = vadd.f32 %v359_v8, %v340_v5 }
  0x9b   : > { %v441_v11 = vld [vmem:[#allocation3] sm:$0x3] (%p215_p0) }
  0x9c   : > { %366 = vst.msk [vmem:[#allocation2] sm:$0x3] %vm1142_vm0, %v361_v9  ;;  %v458_v13 = vperm.slane (%p215_p0), %v441_v11, 0  ;;  %v459_v16 = vperm.slane (%p215_p0), %v441_v11, 1 }
  0x9e   : > { %v553_v19 = vsel %vm544_vm1, %v458_v13, 0.0  ;;  %v510_v38 = vsel %vm501_vm2, %v458_v13, 0.0  ;;  %v462_v20 = vsel %vm443_vm3, %v458_v13, 0.0  ;;  %v554_v25 = vsel %vm545_vm4, %v459_v16, 0.0 }
  0x9f   : > { %v555_v22 = vsel %vm358_vm15, %v553_v19, 0.0  ;;  %v512_v24 = vsel %vm358_vm15, %v510_v38, 0.0  ;;  %v511_v26 = vsel %vm502_vm5, %v459_v16, 0.0  ;;  %v464_v27 = vsel %vm358_vm15, %v462_v20, 0.0 }
  0xa0   : > { %v556_v28 = vsel %vm358_vm15, %v554_v25, 0.0  ;;  %v513_v29 = vsel %vm358_vm15, %v511_v26, 0.0  ;;  %v463_v30 = vsel %vm444_vm6, %v459_v16, 0.0  ;;  %v596_v58 = vsel %vm587_vm7, %v458_v13, 0.0 }
  0xa1   : > { %v557_v23 = vadd.f32 %v556_v28, %v555_v22  ;;  %v514_v32 = vadd.f32 %v513_v29, %v512_v24  ;;  %v465_v33 = vsel %vm358_vm15, %v463_v30, 0.0  ;;  %v597_v59 = vsel %vm588_vm8, %v459_v16, 0.0  ;;  %v1253_v28 = vpop.eup %835 }
  0xa2   : > { %v466_v35 = vadd.f32 %v465_v33, %v464_v27  ;;  %v598_v63 = vsel %vm358_vm15, %v596_v58, 0.0  ;;  %v599_v0 = vsel %vm358_vm15, %v597_v59, 0.0 }
  0xa3   : > { %v440_v39 = vld [vmem:[#allocation2] sm:$0x3]  ;;  %558 = vadd.xlane.f32.xlu2 %v557_v23  ;;  %515 = vadd.xlane.f32.xlu1 %v514_v32  ;;  %v600_v3 = vadd.f32 %v599_v0, %v598_v63  ;;  %v631_v32 = vmul.f32 4.0, %v1253_v28 }
  0xa4   : > { %467 = vadd.xlane.f32.xlu0 %v466_v35  ;;  %v446_v50 = vperm.slane %v440_v39, 0  ;;  %v447_v51 = vperm.slane %v440_v39, 1 }
  0xa5   : > { %v632_v36 = vsub.f32 1.0, %v631_v32 }
  0xa6   : > { %v450_v57 = vsel %vm443_vm3, %v446_v50, 0.0  ;;  %v451_v60 = vsel %vm444_vm6, %v447_v51, 0.0  ;;  %v546_v4 = vsel %vm544_vm1, %v446_v50, 0.0  ;;  %v547_v5 = vsel %vm545_vm4, %v447_v51, 0.0 }
  0xa7   : > { %v452_v62 = vsel %vm358_vm15, %v450_v57, 0.0  ;;  %v453_v47 = vsel %vm358_vm15, %v451_v60, 0.0  ;;  %v589_v6 = vsel %vm587_vm7, %v446_v50, 0.0  ;;  %v590_v7 = vsel %vm588_vm8, %v447_v51, 0.0 }
  0xa8   : > { %v454_v2 = vadd.f32 %v453_v47, %v452_v62  ;;  %v503_v8 = vsel %vm501_vm2, %v446_v50, 0.0  ;;  %v504_v9 = vsel %vm502_vm5, %v447_v51, 0.0  ;;  %v548_v10 = vsel %vm358_vm15, %v546_v4, 0.0 }
  0xa9   : > { %v549_v11 = vsel %vm358_vm15, %v547_v5, 0.0  ;;  %v591_v12 = vsel %vm358_vm15, %v589_v6, 0.0  ;;  %v592_v13 = vsel %vm358_vm15, %v590_v7, 0.0  ;;  %v505_v14 = vsel %vm358_vm15, %v503_v8, 0.0 }
  0xaa   : > { %v506_v16 = vsel %vm358_vm15, %v504_v9, 0.0  ;;  %v550_v15 = vadd.f32 %v549_v11, %v548_v10  ;;  %v593_v17 = vadd.f32 %v592_v13, %v591_v12  ;;  %v1267_v48 = vmul.f32 %v1253_v28, %v632_v36 }
  0xab   : > { %565 = vadd.xlane.f32.xlu2 %v564_v52  ;;  %522 = vadd.xlane.f32.xlu1 %v521_v53  ;;  %v507_v19 = vadd.f32 %v506_v16, %v505_v14 }
  0xac   : > { %479 = vadd.xlane.f32.xlu0 %v478_v54 }
  0xb3   : > { %608 = vadd.xlane.f32.xlu1 %v607_v1  ;;  %455 = vadd.xlane.f32.xlu2 %v454_v2 }
  0xb4   : > { %601 = vadd.xlane.f32.xlu0 %v600_v3 }
  0xbb   : > { %551 = vadd.xlane.f32.xlu1 %v550_v15  ;;  %594 = vadd.xlane.f32.xlu2 %v593_v17 }
  0xbc   : > { %508 = vadd.xlane.f32.xlu0 %v507_v19 }
 0x116   : > { %v559_v18 = vpop.xlane.xlu2 %558  ;;  %v516_v38 = vpop.xlane.xlu1 %515 }
 0x117   : > { %v468_v20 = vpop.xlane.xlu0 %467 }
 0x11e   : > { %v566_v22 = vpop.xlane.xlu2 %565  ;;  %v523_v24 = vpop.xlane.xlu1 %522 }
 0x11f   : > { %v569_v25 = vadd.f32 %v566_v22, %v559_v18  ;;  %v526_v26 = vadd.f32 %v523_v24, %v516_v38  ;;  %v480_v27 = vpop.xlane.xlu0 %479 }
 0x120   : > { %v483_v29 = vadd.f32 %v480_v27, %v468_v20 }
 0x121   : > { %v1255_v30 = vadd.f32 1e-06, %v569_v25  ;;  %v527_v31 = vadd.f32 1e-06, %v526_v26 }
 0x122   : > { %v484_v23 = vadd.f32 1e-06, %v483_v29 }
 0x123   : > { %837 = vrcp.f32 %v1255_v30  ;;  %vm576_vm9 = vweird.f32 %v1255_v30  ;;  %v580_v50 = vand.u32 2147483647, %v1255_v30  ;;  %v582_v51 = vand.u32 2147483648, %v1255_v30 }
 0x124   : > { %839 = vrcp.f32 %v527_v31  ;;  %vm533_vm10 = vweird.f32 %v527_v31  ;;  %v537_v53 = vand.u32 2147483647, %v527_v31  ;;  %v539_v56 = vand.u32 2147483648, %v527_v31 }
 0x125   : > { %841 = vrcp.f32 %v484_v23  ;;  %vm490_vm12 = vweird.f32 %v484_v23  ;;  %v496_v60 = vand.u32 2147483648, %v484_v23  ;;  %v494_v47 = vand.u32 2147483647, %v484_v23 }
 0x126   : > { %v609_v33 = vpop.xlane.xlu1 %608  ;;  %v456_v35 = vpop.xlane.xlu2 %455  ;;  %vm538_vm15 = vcmp.eq.f32.partialorder %v537_v53, 8.507059e+37  ;;  %v540_v3 = vor.u32 1.1754944e-38, %v539_v56  ;;  %vm581_vm4 = vcmp.eq.f32.partialorder %v580_v50, 8.507059e+37  ;;  %v583_v18 = vor.u32 1.1754944e-38, %v582_v51 }
 0x127   : > { %v602_v34 = vpop.xlane.xlu0 %601  ;;  %v481_v57 = vmul.f32 2.0, %v456_v35  ;;  %v497_v10 = vor.u32 1.1754944e-38, %v496_v60  ;;  %vm495_vm3 = vcmp.eq.f32.partialorder %v494_v47, 8.507059e+37 }
 0x128   : > { %v612_v37 = vadd.f32 %v609_v33, %v602_v34 }
 0x129   : > { %v1259_v39 = vpop.eup %837  ;;  %v482_v6 = vadd.f32 1e-06, %v481_v57 }
 0x12a   : > { %v840_v40 = vpop.eup %839  ;;  %v572_v41 = vmul.f32 %v1259_v39, %v1255_v30  ;;  %v1263_v43 = vadd.f32 1e-06, %v612_v37  ;;  %vm577_vm14 = vweird.f32 %v1259_v39 }
 0x12b   : > { %v842_v44 = vpop.eup %841  ;;  %v529_v46 = vmul.f32 %v840_v40, %v527_v31  ;;  %vm534_vm11 = vweird.f32 %v840_v40  ;;  %vm1284_vm2 = vmor %vm576_vm9, %vm577_vm14  ;;  %v634_v31 = vadd.f32 %v1253_v28, %v1267_v48  ;;  %vm635_vm9 = vweird.f32 %v1253_v28 }
 0x12c   : > { %v486_v42 = vmul.f32 %v842_v44, %v484_v23  ;;  %843 = vrcp.f32 %v1263_v43  ;;  %v573_v49 = vsub.f32 1.0, %v572_v41  ;;  %vm491_vm13 = vweird.f32 %v842_v44  ;;  %vm535_vm0 = vmor %vm533_vm10, %vm534_vm11 }
 0x12d   : > { %v530_v52 = vsub.f32 1.0, %v529_v46  ;;  %vm492_vm1 = vmor %vm490_vm12, %vm491_vm13  ;;  %v625_v20 = vand.u32 2147483648, %v1263_v43  ;;  %v623_v24 = vand.u32 2147483647, %v1263_v43  ;;  %vm619_vm6 = vweird.f32 %v1263_v43 }
 0x12e   : > { %v487_v54 = vsub.f32 1.0, %v486_v42  ;;  %v574_v55 = vmul.f32 %v1259_v39, %v573_v49  ;;  %v552_v45 = vpop.xlane.xlu1 %551  ;;  %v595_v1 = vpop.xlane.xlu2 %594  ;;  %v636_v36 = vsel %vm635_vm9, %v1253_v28, %v634_v31  ;;  %vm639_vm10 = vcmask 0  }
 0x12f   : > { %v531_v58 = vmul.f32 %v840_v40, %v530_v52  ;;  %v509_v59 = vpop.xlane.xlu0 %508  ;;  %v567_v8 = vmul.f32 2.0, %v552_v45  ;;  %v610_v14 = vmul.f32 2.0, %v595_v1  ;;  %v626_v30 = vor.u32 1.1754944e-38, %v625_v20 }
 0x130   : > { %v524_v61 = vmul.f32 2.0, %v509_v59  ;;  %v488_v62 = vmul.f32 %v842_v44, %v487_v54  ;;  %v575_v63 = vadd.f32 %v1259_v39, %v574_v55  ;;  %vm624_vm8 = vcmp.eq.f32.partialorder %v623_v24, 8.507059e+37 }
 0x131   : > { %v532_v0 = vadd.f32 %v840_v40, %v531_v58  ;;  %v568_v21 = vadd.f32 1e-06, %v567_v8  ;;  %v611_v29 = vadd.f32 1e-06, %v610_v14 }
 0x132   : > { %v844_v2 = vpop.eup %843  ;;  %v525_v4 = vadd.f32 1e-06, %v524_v61  ;;  %v489_v5 = vadd.f32 %v842_v44, %v488_v62  ;;  %v579_v16 = vsel %vm1284_vm2, %v1259_v39, %v575_v63 }
 0x133   : > { %v615_v7 = vmul.f32 %v844_v2, %v1263_v43  ;;  %v536_v9 = vsel %vm535_vm0, %v840_v40, %v532_v0  ;;  %vm620_vm5 = vweird.f32 %v844_v2  ;;  %v584_v25 = vsel %vm581_vm4, %v583_v18, %v579_v16 }
 0x134   : > { %v541_v12 = vsel %vm538_vm15, %v540_v3, %v536_v9  ;;  %v493_v13 = vsel %vm492_vm1, %v842_v44, %v489_v5  ;;  %vm621_vm7 = vmor %vm619_vm6, %vm620_vm5  ;;  %v585_v23 = vmul.f32 %v584_v25, %v568_v21 }
 0x135   : > { %v542_v15 = vmul.f32 %v541_v12, %v525_v4  ;;  %v498_v17 = vsel %vm495_vm3, %v497_v10, %v493_v13  ;;  %v616_v19 = vsub.f32 1.0, %v615_v7 }
 0x136   : > { %v499_v38 = vmul.f32 %v498_v17, %v482_v6 }
 0x137   : > { %v617_v22 = vmul.f32 %v844_v2, %v616_v19 }
 0x138   : > { %v543_v26 = vadd.f32 %v542_v15, %v499_v38 }
 0x139   : > { %v618_v27 = vadd.f32 %v844_v2, %v617_v22 }
 0x13a   : > { %v586_v34 = vadd.f32 %v585_v23, %v543_v26 }
 0x13b   : > { %v622_v32 = vsel %vm621_vm7, %v844_v2, %v618_v27 }
 0x13c   : > { %v627_v33 = vsel %vm624_vm8, %v626_v30, %v622_v32 }
 0x13d   : > { %v628_v35 = vmul.f32 %v627_v33, %v611_v29 }
 0x13f   : > { %v629_v37 = vadd.f32 %v628_v35, %v586_v34 }
 0x141   : > { %v637_v39 = vmul.f32 %v636_v36, %v629_v37 }
 0x143   : > { %v638_v40 = vsub.f32 1.0, %v637_v39 }
 0x145   : > { %640 = vst.msk [vmem:[#allocation10] sm:$0x1] %vm639_vm10, %v638_v40 }
 0x146 PF: > { %p775_p1 = scmp.eq.s32.totalorder %s737_s15, 1  ;;  %s649_s22 = sshll.u32 %s1323_s2, 4  ;;  %s650_s22 = int_to_ptr.hbm [resolvable:$true] %s649_s22 }
 0x147   : > { %s996_s3 = smov [#allocation10]  }
 0x148   : > { %s647_s4 = sshll.u32 %s996_s3, 4  ;;  %s648_s4 = int_to_ptr.vmem [resolvable:$true] %s647_s4 }
 0x149   : > { %764 = dma.vmem_to_hbm [thread:$0]  (%p775_p1), %s648_s4, 16, %s650_s22, [#allocation7]  }
 0x14a   : > { %966 = dma.done.wait (%p775_p1), [#allocation7], 16  }
 0x14b   : > { %968 = vsyncadd (%p775_p1), [#allocation7], 4294967280 }
 0x14c PF: > { %s19_s14 = sadd.s32 1, %s991_s14   ;;  %s1337_s9 = smov %s975_s10 }
 0x14d   : > { %p16_p2 = scmp.ge.s32.totalorder %s19_s14, 4   ;;  %s1338_s10 = smov %s979_s11 }
 0x14e   : > { %s1339_s11 = smov %s1063_s21  ;;  %s1340_s12 = smov %s987_s13 }
 0x14f   : > { %s1341_s13 = smov %s1343_s16  ;;  %18 = sbr.rel (!%p16_p2) target bundleno = 7 (0x7), region = 86 }
 0x154   :  { %663 = vsyncpa [#allocation6], 1 }
 0x155   :  { %665 = vsyncpa [#allocation6 + $0x1], 1 }
 0x156   :  { %666 = vsyncpa [#allocation9], 1 }
 0x157   :  { %668 = vsyncpa [#allocation9 + $0x1], 1 }
 0x158   :  { %669 = vsyncpa [#allocation7], 1 }
 0x159   :  { %671 = vsyncpa [#allocation7 + $0x1], 1 }

</bundles_post_ra>
